<compile_context>
chip_gen: v6e
topology: v6e:2x2x1
jax: 0.10.0
libtpu: 0.0.40
codegen_flags: <defaults>
</compile_context>

<pallas_src>
from functools import partial

import jax
import jax.numpy as jnp
from jax.experimental import pallas as pl
from jax.experimental.pallas import tpu as pltpu

_LANES = 512                    # preferred lane width when the flat reshape is free
_MAX_FULL_LANES = 4096          # keep the whole last dim as one lane tile up to this
_TARGET_BLOCK_BYTES = 2 << 20   # ~2 MiB per block buffer (dtype-aware row count)
_SMALL_N = 1 << 17              # below ~131K elements: plain fused XLA elementwise


def _hswish_kernel(x_ref, o_ref):
    # h_swish(x) = x * relu6(x + 3) / 6, computed in f32 on the VPU.
    x = x_ref[...].astype(jnp.float32)
    o_ref[...] = (x * jnp.clip(x + 3.0, 0.0, 6.0) * (1.0 / 6.0)).astype(o_ref.dtype)


def _hswish_jnp(x):
    # Fast path / fallback: same math, left to XLA's elementwise fusion.
    # TODO(synk): PyTorch h_swish is float-only; non-float inputs are promoted
    # to f32 here and truncated back on the cast.
    xf = x.astype(jnp.float32)
    return (xf * jnp.clip(xf + 3.0, 0.0, 6.0) * (1.0 / 6.0)).astype(x.dtype)


def _round_up(a, m):
    return ((a + m - 1) // m) * m


def _round_down(a, m):
    return (a // m) * m


def pallas_hardswish(x, *, min_pallas_elems=_SMALL_N):
    """Elementwise h_swish for any shape via a lane-dense 2D view (no pad/slice)."""
    shape, dtype = x.shape, x.dtype
    n = x.size

    # Fast path: tiny / empty / non-float inputs.
    if n == 0 or n < min_pallas_elems or not jnp.issubdtype(dtype, jnp.floating):
        return _hswish_jnp(x)

    itemsize = x.dtype.itemsize
    target_elems = max(_TARGET_BLOCK_BYTES // itemsize, 8 * 128)

    # Free 2D view (no data movement):
    #   * exact (n//512, 512) flatten when n divides the lane width,
    #   * otherwise collapse leading dims and keep the natural last dim as lanes.
    if n % _LANES == 0:
        R, C = n // _LANES, _LANES
    elif x.ndim >= 2:
        R, C = n // shape[-1], shape[-1]
    else:
        R, C = 1, n
    view = x.reshape(R, C)

    # Lane tile: whole last dim when small, else a 128-multiple tile (tail masked).
    lane_budget = max(_round_down(target_elems // 8, 128), 128)
    if C <= _MAX_FULL_LANES or C <= lane_budget:
        tc, grid_c = C, 1
    else:
        tc = lane_budget
        grid_c = pl.cdiv(C, tc)

    # Row tile: ~_TARGET_BLOCK_BYTES of lane-padded VMEM per block buffer.
    tc_pad = _round_up(tc, 128)
    tr_target = max(target_elems // tc_pad, 8)
    if tr_target >= R:
        if grid_c == 1 and R >= 16:
            # Split rows so the parallel axis has >= 2 steps (keeps both v7x TCs busy).
            tr = _round_up(pl.cdiv(R, 2), 8)
        else:
            tr = R
    else:
        tr = _round_down(tr_target, 8)
    grid_r = pl.cdiv(R, tr)

    out = pl.pallas_call(
        _hswish_kernel,
        out_shape=jax.ShapeDtypeStruct((R, C), dtype),
        grid=(grid_r, grid_c),
        in_specs=[pl.BlockSpec((tr, tc), lambda i, j: (i, j))],
        out_specs=pl.BlockSpec((tr, tc), lambda i, j: (i, j)),
        compiler_params=pltpu.CompilerParams(
            dimension_semantics=("parallel", "parallel")),
    )(view)

    return out.reshape(shape)


def _reference_hswish(x):
    # Pure-JAX reference mirroring the PyTorch module literally: x * relu6(x+3) / 6.
    xf = x.astype(jnp.float32)
    return xf * jnp.clip(xf + 3.0, 0.0, 6.0) / 6.0


if __name__ == "__main__":
    key = jax.random.PRNGKey(0)
    k1, k2, k3, k4 = jax.random.split(key, 4)

    fwd = jax.jit(pallas_hardswish)                              # default thresholds
    fwd_force = jax.jit(partial(pallas_hardswish, min_pallas_elems=1))  # force Pallas

    # 1) Canonical small NCHW input (batch=2, channels=4, spatial=16x16), scaled so
    #    both relu6 clip boundaries are exercised.  Forced through the Pallas path
    #    (single (4, 512) lane-dense block).
    x = jax.random.normal(k1, (2, 4, 16, 16), dtype=jnp.float32) * 4.0
    y = fwd_force(x)
    jax.block_until_ready(y)
    assert y.shape == x.shape and y.dtype == x.dtype
    assert float(jnp.max(jnp.abs(y.astype(jnp.float32) - _reference_hswish(x)))) < 1e-4

    # Same small input through the default wrapper -> jnp fast path (still correct).
    y_small = fwd(x)
    jax.block_until_ready(y_small)
    assert float(jnp.max(jnp.abs(y_small.astype(jnp.float32) - _reference_hswish(x)))) < 1e-4

    # 2) Larger f32 feature map: n % 512 == 0, multi-step parallel grid (2 row tiles).
    x_big = jax.random.normal(k2, (8, 64, 32, 32), dtype=jnp.float32) * 4.0
    y_big = fwd(x_big)
    jax.block_until_ready(y_big)
    assert y_big.shape == x_big.shape and y_big.dtype == x_big.dtype
    assert float(jnp.max(jnp.abs(y_big.astype(jnp.float32) - _reference_hswish(x_big)))) < 1e-4

    # 3) Ragged size (not divisible by 512): natural last dim as lanes, masked tail
    #    row block, no pad/slice round-trip.
    x_rag = jax.random.normal(k3, (4, 333, 517), dtype=jnp.float32) * 4.0
    y_rag = fwd(x_rag)
    jax.block_until_ready(y_rag)
    assert y_rag.shape == x_rag.shape and y_rag.dtype == x_rag.dtype
    assert float(jnp.max(jnp.abs(y_rag.astype(jnp.float32) - _reference_hswish(x_rag)))) < 1e-4

    # 4) bf16 input: dtype-aware row tile (block bytes held ~constant).
    x_bf = (jax.random.normal(k4, (8, 64, 32, 32), dtype=jnp.float32) * 4.0).astype(jnp.bfloat16)
    y_bf = fwd(x_bf)
    jax.block_until_ready(y_bf)
    assert y_bf.shape == x_bf.shape and y_bf.dtype == jnp.bfloat16
    assert float(jnp.max(jnp.abs(y_bf.astype(jnp.float32) - _reference_hswish(x_bf)))) < 0.25

    print("KERNEL_OK")
</pallas_src>

<mosaic_0001>
module attributes {stable_mosaic.version = 11 : i64} {
  func.func @_hswish_kernel(%arg0: i32, %arg1: i32, %arg2: memref<4x512xf32, #tpu.memory_space<vmem>>, %arg3: memref<4x512xf32, #tpu.memory_space<vmem>>) attributes {dimension_semantics = [#tpu.dimension_semantics<parallel>, #tpu.dimension_semantics<parallel>], iteration_bounds = array<i64: 1, 1>, scalar_prefetch = 0 : i64, scratch_operands = 0 : i64, tpu.core_type = #tpu.core_type<tc>, window_params = [{transform_indices = @transform_0, window_bounds = array<i64: 4, 512>}, {transform_indices = @transform_1, window_bounds = array<i64: 4, 512>}]} {
    %c0 = arith.constant 0 : index
    %c0_0 = arith.constant 0 : index
    %0 = vector.load %arg2[%c0, %c0_0] : memref<4x512xf32, #tpu.memory_space<vmem>>, vector<4x512xf32>
    %cst = arith.constant 3.000000e+00 : f32
    %1 = vector.broadcast %cst : f32 to vector<4x512xf32>
    %2 = arith.addf %0, %1 : vector<4x512xf32>
    %cst_1 = arith.constant 0.000000e+00 : f32
    %cst_2 = arith.constant 6.000000e+00 : f32
    %3 = vector.broadcast %cst_1 : f32 to vector<4x512xf32>
    %4 = arith.maximumf %3, %2 : vector<4x512xf32>
    %5 = vector.broadcast %cst_2 : f32 to vector<4x512xf32>
    %6 = arith.minimumf %5, %4 : vector<4x512xf32>
    %7 = arith.mulf %0, %6 : vector<4x512xf32>
    %cst_3 = arith.constant 0.166666672 : f32
    %8 = vector.broadcast %cst_3 : f32 to vector<4x512xf32>
    %9 = arith.mulf %7, %8 : vector<4x512xf32>
    %c0_4 = arith.constant 0 : index
    %c0_5 = arith.constant 0 : index
    %10 = vector.load %arg3[%c0_4, %c0_5] : memref<4x512xf32, #tpu.memory_space<vmem>>, vector<4x512xf32>
    tpu.vector_store %arg3[%c0_4, %c0_5], %9 {strides = array<i32>} : memref<4x512xf32, #tpu.memory_space<vmem>>, vector<4x512xf32>,
    return
  }
  func.func @transform_0(%arg0: i32, %arg1: i32) -> (i32, i32) {
    %c0_i32 = arith.constant 0 : i32
    return %arg0, %arg1 : i32, i32
  }
  func.func @transform_1(%arg0: i32, %arg1: i32) -> (i32, i32) {
    %c0_i32 = arith.constant 0 : i32
    return %arg0, %arg1 : i32, i32
  }
}

</mosaic_0001>

<bundles_post_ra>
// kernel: pallas_hardswish.1
= control target key start
LH: loop header
LB: loop body
LE: loop exit
PB: predicated region body
PF: predicated region fallthrough
CT: control target
= control target key end

     0   :  { %s48_s0 = inlined_call_operand.vmem [shape: f32[4,512], index: 0, kind: input, shape index: {}]   ;;  %s49_s1 = inlined_call_operand.vmem [shape: f32[4,512], index: 1, kind: output, shape index: {}]  }
   0x1   :  { %v8_v0 = vld [vmem:[%s48_s0] sm:$0xff]  ;;  %v9_v1 = vld [vmem:[%s48_s0 + $0x8] sm:$0xff] }
   0x2   :  { %v10_v2 = vadd.f32 3.0, %v8_v0  ;;  %v11_v3 = vadd.f32 3.0, %v9_v1 }
   0x4   :  { %v12_v4 = vmax.f32 %v10_v2, 0.0  ;;  %v13_v5 = vmax.f32 %v11_v3, 0.0 }
   0x6   :  { %v14_v6 = vmin.f32 %v12_v4, 6.0  ;;  %v15_v7 = vmin.f32 %v13_v5, 6.0 }
   0x8   :  { %v16_v8 = vmul.f32 %v14_v6, %v8_v0  ;;  %v17_v9 = vmul.f32 %v15_v7, %v9_v1 }
   0xa   :  { %v18_v10 = vmul.f32 0.16666667, %v16_v8  ;;  %v19_v11 = vmul.f32 0.16666667, %v17_v9 }
   0xc   :  { %20 = vst [vmem:[%s49_s1] sm:$0xff] %v18_v10  ;;  %21 = vst [vmem:[%s49_s1 + $0x8] sm:$0xff] %v19_v11 }

</bundles_post_ra>
